<compile_context>
chip_gen: v6e
topology: v6e:2x2x1
jax: 0.10.0
libtpu: 0.0.40
codegen_flags: <defaults>
</compile_context>

<pallas_src>
import functools

import jax
import jax.numpy as jnp
from jax.experimental import pallas as pl
from jax.experimental.pallas import tpu as pltpu


def _ce_smooth_kernel(logits_ref, tgt_ref, sw_ref, loss_ref, *,
                      smoothing, n_classes, n_rows, tn):
    """Per-tile smoothed-label cross entropy (per-sample losses only)."""
    logits = logits_ref[...].astype(jnp.float32)      # (tn, C)
    tgt = tgt_ref[...]                                # (tn, 1) int32
    sw = sw_ref[...].astype(jnp.float32)              # (tn, 1)

    # Numerically stable log-sum-exp along classes (lane axis).
    row_max = jnp.max(logits, axis=-1, keepdims=True)
    shifted = logits - row_max                        # (tn, C)
    lse = jnp.log(jnp.sum(jnp.exp(shifted), axis=-1, keepdims=True))

    # Single fused weighted reduction over classes:
    #   loss = lse - sum_c w_c * shifted_c,
    #   w_c  = (1-s) + s/C  at c == target, else s/C      (sum_c w_c == 1)
    uniform = smoothing / n_classes
    cls_idx = jax.lax.broadcasted_iota(jnp.int32, (1, n_classes), 1)   # (1, C)
    w = jnp.where(cls_idx == tgt, 1.0 - smoothing + uniform, uniform)  # (tn, C)
    weighted = jnp.sum(w * shifted, axis=-1, keepdims=True)            # (tn, 1)

    loss = (lse - weighted) * sw                      # (tn, 1)

    # Ragged-tail masking: the last tile may cover rows >= N whose data is
    # undefined (no padding was done in HBM). Force those rows to exactly 0 so
    # NaN/Inf from garbage logits can never reach the reduction.
    row_idx = (pl.program_id(0) * tn
               + jax.lax.broadcasted_iota(jnp.int32, (tn, 1), 0))
    loss_ref[...] = jnp.where(row_idx < n_rows, loss, 0.0)


def _vmem_limit_bytes():
    """Generation-aware scoped-VMEM limit (leaves headroom for the compiler)."""
    try:
        cap = pltpu.get_tpu_info().vmem_capacity_bytes
    except Exception:
        cap = 64 << 20                                 # conservative fallback
    # ~96 MiB on 128-MiB parts (v5e/v6e), ~48 MiB on 64-MiB parts (v7x).
    return int(min(cap * 3 // 4, 100 << 20))


def _choose_tn(n_rows, n_classes, itemsize, tile_budget_bytes):
    """Largest row tile whose double-buffered input + f32 temps fit the budget."""
    # Dtype-aware sublane packing: 8 rows for 32-bit, 16 for bf16, 32 for int8.
    sub = max(8, 32 // itemsize)
    # Per-row VMEM cost: 2x (double-buffered) input tile + ~2 full-width f32
    # temporaries (shifted / exp / select live in vregs or spill).
    per_row = 2 * n_classes * itemsize + 2 * n_classes * 4
    rows_by_vmem = max(sub, tile_budget_bytes // per_row)
    tn = min(max(n_rows, 1), rows_by_vmem, 1024)
    if tn < sub:
        # Tiny N: a block equal to the full array dim is always legal.
        return int(tn) if tn == n_rows else int(sub)
    return int((tn // sub) * sub)


def cross_entropy_loss(logits, target, sample_weight=None, *,
                       smoothing=0.1, reduction="mean", weight=None, tn=None):
    """JAX/Pallas equivalent of CrossEntropyLoss.forward."""
    N, C = logits.shape
    itemsize = jnp.dtype(logits.dtype).itemsize

    vmem_limit = _vmem_limit_bytes()
    if tn is None:
        tn = _choose_tn(N, C, itemsize, vmem_limit - (2 << 20))

    if sample_weight is None:
        sw = jnp.ones((N,), jnp.float32)
    else:
        sw = sample_weight.astype(jnp.float32)

    tgt = target.astype(jnp.int32)

    if smoothing == 0 and weight is not None:
        # The module's smoothing==0 branch calls F.cross_entropy(..., weight=w,
        # reduction='none') and then takes a plain .mean()/.sum(); the per-class
        # weight therefore folds into a per-sample multiplier and the mean still
        # divides by N (not by the weight sum).
        sw = sw * weight.astype(jnp.float32)[tgt]

    tgt2 = tgt.reshape(N, 1)
    sw2 = sw.reshape(N, 1)

    grid_n = pl.cdiv(N, tn)

    kern = functools.partial(_ce_smooth_kernel,
                             smoothing=float(smoothing), n_classes=C,
                             n_rows=N, tn=tn)

    cost = pl.CostEstimate(
        flops=5 * N * C,
        transcendentals=N * C,
        bytes_accessed=N * C * itemsize + N * 12,
    )

    per_sample = pl.pallas_call(
        kern,
        out_shape=jax.ShapeDtypeStruct((N, 1), jnp.float32),
        grid_spec=pltpu.PrefetchScalarGridSpec(
            num_scalar_prefetch=0,
            grid=(grid_n,),
            in_specs=[
                pl.BlockSpec((tn, C), lambda i: (i, 0)),   # logits tile
                pl.BlockSpec((tn, 1), lambda i: (i, 0)),   # targets tile
                pl.BlockSpec((tn, 1), lambda i: (i, 0)),   # sample_weight tile
            ],
            out_specs=pl.BlockSpec((tn, 1), lambda i: (i, 0)),
        ),
        compiler_params=pltpu.CompilerParams(
            dimension_semantics=("parallel",),             # no cross-tile deps
            vmem_limit_bytes=vmem_limit,
        ),
        cost_estimate=cost,
    )(logits, tgt2, sw2)

    if reduction == "mean":
        return jnp.sum(per_sample) / N
    elif reduction == "sum":
        return jnp.sum(per_sample)
    else:  # 'none'
        return per_sample[:, 0]


def _ref_loss(logits, target, sample_weight, smoothing, reduction="mean"):
    logits = logits.astype(jnp.float32)
    C = logits.shape[-1]
    one_hot = jax.nn.one_hot(target, C, dtype=jnp.float32)
    smooth = one_hot * (1.0 - smoothing) + smoothing / C
    log_probs = jax.nn.log_softmax(logits, axis=-1)
    loss = jnp.sum(-smooth * log_probs, axis=-1) * sample_weight
    if reduction == "mean":
        return jnp.mean(loss)
    if reduction == "sum":
        return jnp.sum(loss)
    return loss


if __name__ == "__main__":
    # Module has no trainable parameters; the per-class `weight` only affects
    # the smoothing==0 branch (handled in the wrapper, not exercised here).
    key = jax.random.PRNGKey(0)
    k1, k2, k3 = jax.random.split(key, 3)

    # 1) Small-shape smoke test matching the module's (N, C) contract.
    N, C = 16, 32
    logits = jax.random.normal(k1, (N, C), dtype=jnp.float32)
    target = jax.random.randint(k2, (N,), 0, C, dtype=jnp.int32)
    sample_weight = jax.random.uniform(k3, (N,), dtype=jnp.float32)

    loss = jax.block_until_ready(
        cross_entropy_loss(logits, target, sample_weight,
                           smoothing=0.1, reduction="mean"))
    ref = _ref_loss(logits, target, sample_weight, 0.1)
    assert jnp.allclose(loss, ref, atol=1e-5, rtol=1e-5), (loss, ref)

    # 2) Row count not a multiple of the sublane tile, class count not a
    #    multiple of 128 (lane padding), bf16 logits kept bf16 on the DMA path.
    k4, k5, k6 = jax.random.split(jax.random.PRNGKey(0), 3)
    N2, C2 = 13, 160
    logits2 = jax.random.normal(k4, (N2, C2), dtype=jnp.float32).astype(jnp.bfloat16)
    target2 = jax.random.randint(k5, (N2,), 0, C2, dtype=jnp.int32)
    sw_2 = jax.random.uniform(k6, (N2,), dtype=jnp.float32)

    loss2 = jax.block_until_ready(
        cross_entropy_loss(logits2, target2, sw_2, smoothing=0.1, reduction="mean"))
    ref2 = _ref_loss(logits2, target2, sw_2, 0.1)
    assert jnp.allclose(loss2, ref2, atol=1e-4, rtol=1e-4), (loss2, ref2)

    # 3) Force a multi-tile grid with a ragged tail (N=13, tn=8 -> 2 tiles, the
    #    second tile's rows 13..15 are undefined and must be masked to 0).
    loss3 = jax.block_until_ready(
        cross_entropy_loss(logits2.astype(jnp.float32), target2, sw_2,
                           smoothing=0.1, reduction="sum", tn=8))
    ref3 = _ref_loss(logits2.astype(jnp.float32), target2, sw_2, 0.1, reduction="sum")
    assert jnp.allclose(loss3, ref3, atol=1e-4, rtol=1e-4), (loss3, ref3)

    print("KERNEL_OK")
</pallas_src>

<mosaic_0001>
module attributes {stable_mosaic.version = 11 : i64} {
  func.func @_ce_smooth_kernel(%arg0: i32, %arg1: memref<16x32xf32, #tpu.memory_space<vmem>>, %arg2: memref<16x1xi32, #tpu.memory_space<vmem>>, %arg3: memref<16x1xf32, #tpu.memory_space<vmem>>, %arg4: memref<16x1xf32, #tpu.memory_space<vmem>>) attributes {dimension_semantics = [#tpu.dimension_semantics<parallel>], iteration_bounds = array<i64: 1>, scalar_prefetch = 0 : i64, scratch_operands = 0 : i64, tpu.core_type = #tpu.core_type<tc>, window_params = [{transform_indices = @transform_0, window_bounds = array<i64: 16, 32>}, {transform_indices = @transform_1, window_bounds = array<i64: 16, 1>}, {transform_indices = @transform_2, window_bounds = array<i64: 16, 1>}, {transform_indices = @transform_3, window_bounds = array<i64: 16, 1>}]} {
    %c0 = arith.constant 0 : index
    %c0_0 = arith.constant 0 : index
    %0 = vector.load %arg1[%c0, %c0_0] : memref<16x32xf32, #tpu.memory_space<vmem>>, vector<16x32xf32>
    %c0_1 = arith.constant 0 : index
    %c0_2 = arith.constant 0 : index
    %1 = vector.load %arg2[%c0_1, %c0_2] : memref<16x1xi32, #tpu.memory_space<vmem>>, vector<16x1xi32>
    %c0_3 = arith.constant 0 : index
    %c0_4 = arith.constant 0 : index
    %2 = vector.load %arg3[%c0_3, %c0_4] : memref<16x1xf32, #tpu.memory_space<vmem>>, vector<16x1xf32>
    %cst = arith.constant dense<0xFF800000> : vector<16xf32>
    %3 = vector.multi_reduction <maximumf>, %0, %cst [1] : vector<16x32xf32> to vector<16xf32>
    %4 = vector.shape_cast %3 : vector<16xf32> to vector<16x1xf32>
    %5 = vector.broadcast %4 : vector<16x1xf32> to vector<16x32xf32>
    %6 = arith.subf %0, %5 : vector<16x32xf32>
    %7 = math.exp %6 : vector<16x32xf32>
    %cst_5 = arith.constant dense<0.000000e+00> : vector<16xf32>
    %8 = vector.multi_reduction <add>, %7, %cst_5 [1] : vector<16x32xf32> to vector<16xf32>
    %9 = vector.shape_cast %8 : vector<16xf32> to vector<16x1xf32>
    %10 = math.log %9 : vector<16x1xf32>
    %11 = tpu.iota {dimensions = array<i32: 1>} : vector<1x32xi32>
    %12 = vector.broadcast %11 : vector<1x32xi32> to vector<16x32xi32>
    %13 = vector.broadcast %1 : vector<16x1xi32> to vector<16x32xi32>
    %14 = arith.cmpi eq, %12, %13 : vector<16x32xi32>
    %cst_6 = arith.constant 0.903124988 : f32
    %cst_7 = arith.constant 3.125000e-03 : f32
    %15 = vector.broadcast %cst_6 : f32 to vector<16x32xf32>
    %16 = vector.broadcast %cst_7 : f32 to vector<16x32xf32>
    %17 = arith.select %14, %15, %16 : vector<16x32xi1>, vector<16x32xf32>
    %18 = arith.mulf %17, %6 : vector<16x32xf32>
    %cst_8 = arith.constant dense<0.000000e+00> : vector<16xf32>
    %19 = vector.multi_reduction <add>, %18, %cst_8 [1] : vector<16x32xf32> to vector<16xf32>
    %20 = vector.shape_cast %19 : vector<16xf32> to vector<16x1xf32>
    %21 = arith.subf %10, %20 : vector<16x1xf32>
    %22 = arith.mulf %21, %2 : vector<16x1xf32>
    %c16_i32 = arith.constant 16 : i32
    %23 = arith.muli %arg0, %c16_i32 : i32
    %24 = tpu.iota {dimensions = array<i32: 0>} : vector<16x1xi32>
    %25 = vector.broadcast %23 : i32 to vector<16x1xi32>
    %26 = arith.addi %25, %24 : vector<16x1xi32>
    %c16_i32_9 = arith.constant 16 : i32
    %27 = vector.broadcast %c16_i32_9 : i32 to vector<16x1xi32>
    %28 = arith.cmpi slt, %26, %27 : vector<16x1xi32>
    %cst_10 = arith.constant 0.000000e+00 : f32
    %29 = vector.broadcast %cst_10 : f32 to vector<16x1xf32>
    %30 = arith.select %28, %22, %29 : vector<16x1xi1>, vector<16x1xf32>
    %c0_11 = arith.constant 0 : index
    %c0_12 = arith.constant 0 : index
    %31 = vector.load %arg4[%c0_11, %c0_12] : memref<16x1xf32, #tpu.memory_space<vmem>>, vector<16x1xf32>
    tpu.vector_store %arg4[%c0_11, %c0_12], %30 {strides = array<i32>} : memref<16x1xf32, #tpu.memory_space<vmem>>, vector<16x1xf32>,
    return
  }
  func.func @transform_0(%arg0: i32) -> (i32, i32) {
    %c0_i32 = arith.constant 0 : i32
    %c0_i32_0 = arith.constant 0 : i32
    return %arg0, %c0_i32 : i32, i32
  }
  func.func @transform_1(%arg0: i32) -> (i32, i32) {
    %c0_i32 = arith.constant 0 : i32
    %c0_i32_0 = arith.constant 0 : i32
    return %arg0, %c0_i32 : i32, i32
  }
  func.func @transform_2(%arg0: i32) -> (i32, i32) {
    %c0_i32 = arith.constant 0 : i32
    %c0_i32_0 = arith.constant 0 : i32
    return %arg0, %c0_i32 : i32, i32
  }
  func.func @transform_3(%arg0: i32) -> (i32, i32) {
    %c0_i32 = arith.constant 0 : i32
    %c0_i32_0 = arith.constant 0 : i32
    return %arg0, %c0_i32 : i32, i32
  }
}

</mosaic_0001>

<bundles_post_ra>
// kernel: tpu_custom_call.1
= control target key start
LH: loop header
LB: loop body
LE: loop exit
PB: predicated region body
PF: predicated region fallthrough
CT: control target
= control target key end

     0   :  { %vm20_vm0 = vcmask 261120   ;;  %v97_v2 = vmov 0   ;;  %v43_v11 = vlaneseq  ;;  %v98_v17 = vmov 0.003125   ;;  %s149_s0 = inlined_call_operand.vmem [shape: f32[16,32], index: 0, kind: input, shape index: {}]   ;;  %s150_s1 = inlined_call_operand.vmem [shape: s32[16,1], index: 1, kind: input, shape index: {}]   ;;  %s151_s2 = inlined_call_operand.vmem [shape: f32[16,1], index: 2, kind: input, shape index: {}]   ;;  %s152_s3 = inlined_call_operand.vmem [shape: f32[16,1], index: 3, kind: output, shape index: {}]  }
   0x1   :  { %v14_v0 = vld [vmem:[%s149_s0] sm:$0xff]  ;;  %v15_v1 = vld [vmem:[%s149_s0 + $0x8] sm:$0xff]  ;;  %87 = vset.pattern.permute.xlu1 %v97_v2  ;;  %88 = vset.pattern.permute.xlu0 %v97_v2  ;;  %vm78_vm3 = vcmask 7168  }
   0x2   :  { %v16_v3 = vld [vmem:[%s150_s1] sm:$0xff]  ;;  %v21_v4 = vsel %vm20_vm0, %v14_v0, -inf  ;;  %v17_v5 = vld [vmem:[%s150_s1 + $0x8] sm:$0xff]  ;;  %v24_v6 = vsel %vm20_vm0, %v15_v1, -inf  ;;  %v44_v15 = vand.u32 127, %v43_v11 }
   0x3   :  { %46 = vperm.xlu1 %87, %v16_v3   ;;  %22 = vmax.xlane.f32.xlu0 %v21_v4  ;;  %v18_v33 = vld [vmem:[%s151_s2] sm:$0xff]  ;;  %v19_v38 = vld [vmem:[%s151_s2 + $0x8] sm:$0xff] }
   0x7   :  { %49 = vperm.xlu1 %87, %v17_v5   ;;  %25 = vmax.xlane.f32.xlu0 %v24_v6 }
  0x7e   :  { %v47_v14 = vpop.permute.xlu1 %46 }
  0x7f   :  { %vm51_vm1 = vcmp.eq.s32.totalorder %v44_v15, %v47_v14 }
  0x80   :  { %v53_v18 = vsel %vm51_vm1, 0.903125, %v98_v17 }
  0x82   :  { %v50_v16 = vpop.permute.xlu1 %49 }
  0x83   :  { %vm52_vm2 = vcmp.eq.s32.totalorder %v44_v15, %v50_v16 }
  0x84   :  { %v54_v22 = vsel %vm52_vm2, 0.903125, %v98_v17 }
  0x8c   :  { %v23_v7 = vpop.xlane.xlu0 %22 }
  0x8d   :  { %v27_v8 = vsub.f32 %v14_v0, %v23_v7 }
  0x8f   :  { %v29_v9 = vmul.f32 1.442695, %v27_v8  ;;  %v55_v21 = vmul.f32 %v53_v18, %v27_v8 }
  0x90   :  { %v26_v10 = vpop.xlane.xlu0 %25 }
  0x91   :  { %89 = vpow2.f32 %v29_v9  ;;  %v28_v12 = vsub.f32 %v15_v1, %v26_v10  ;;  %v57_v24 = vsel %vm20_vm0, %v55_v21, 0.0 }
  0x93   :  { %v31_v13 = vmul.f32 1.442695, %v28_v12  ;;  %v56_v26 = vmul.f32 %v54_v22, %v28_v12 }
  0x95   :  { %91 = vpow2.f32 %v31_v13  ;;  %v60_v27 = vsel %vm20_vm0, %v56_v26, 0.0 }
  0x9e   :  { %v90_v19 = vpop.eup %89 }
  0x9f   :  { %v33_v20 = vsel %vm20_vm0, %v90_v19, 0.0 }
  0xa0   :  { %34 = vadd.xlane.f32.xlu0 %v33_v20 }
  0xa2   :  { %v92_v23 = vpop.eup %91 }
  0xa3   :  { %v36_v25 = vsel %vm20_vm0, %v92_v23, 0.0 }
  0xa4   :  { %58 = vadd.xlane.f32.xlu0 %v57_v24  ;;  %37 = vadd.xlane.f32.xlu1 %v36_v25 }
  0xa8   :  { %61 = vadd.xlane.f32.xlu0 %v60_v27 }
 0x129   :  { %v35_v28 = vpop.xlane.xlu0 %34 }
 0x12a   :  { %93 = vlog2.f32 %v35_v28 }
 0x12d   :  { %v38_v29 = vpop.xlane.xlu1 %37  ;;  %v59_v31 = vpop.xlane.xlu0 %58 }
 0x12e   :  { %95 = vlog2.f32 %v38_v29 }
 0x131   :  { %v62_v39 = vpop.xlane.xlu0 %61 }
 0x137   :  { %v94_v30 = vpop.eup %93 }
 0x138   :  { %v40_v32 = vmul.f32 0.6931472, %v94_v30 }
 0x13a   :  { %v63_v34 = vsub.f32 %v40_v32, %v59_v31 }
 0x13b   :  { %v96_v35 = vpop.eup %95 }
 0x13c   :  { %v65_v36 = vmul.f32 %v63_v34, %v18_v33  ;;  %v42_v37 = vmul.f32 0.6931472, %v96_v35 }
 0x13e   :  { %79 = vst.msk [vmem:[%s152_s3] sm:$0xff] %vm78_vm3, %v65_v36  ;;  %v64_v40 = vsub.f32 %v42_v37, %v62_v39 }
 0x140   :  { %v66_v41 = vmul.f32 %v64_v40, %v19_v38 }
 0x142   :  { %80 = vst.msk [vmem:[%s152_s3 + $0x8] sm:$0xff] %vm78_vm3, %v66_v41 }

</bundles_post_ra>
